<compile_context>
chip_gen: v6e
topology: v6e:2x2x1
jax: 0.10.0
libtpu: 0.0.40
codegen_flags: <defaults>
</compile_context>

<pallas_src>
import functools

import jax
import jax.numpy as jnp
from jax.experimental import pallas as pl
from jax.experimental.pallas import tpu as pltpu

B, IN_F, OUT_F, STACK = 2, 2, 3, 3


def _linear_stack_kernel(p_ref, o_ref):
    """Computes t1 = x @ W.T + b on the VPU and writes 3 stacked copies.

    p_ref: (8, OUT_F) f32 packed operand:
        row 0      : W.T[0, :]  (= W[:, 0])
        row 1      : W.T[1, :]  (= W[:, 1])
        row 2      : bias
        rows 3..4  : x[:, 0] broadcast across OUT_F lanes (one row per batch)
        rows 5..6  : x[:, 1] broadcast across OUT_F lanes (one row per batch)
        row 7      : zero padding
    o_ref: (B, STACK, OUT_F) f32
    """
    p = p_ref[...]                       # single (8, OUT_F) load
    w0 = p[0:1, :]                       # (1, OUT_F)
    w1 = p[1:2, :]                       # (1, OUT_F)
    b = p[2:3, :]                        # (1, OUT_F)
    x0 = p[3:3 + B, :]                   # (B, OUT_F), row b == x[b, 0]
    x1 = p[3 + B:3 + 2 * B, :]           # (B, OUT_F), row b == x[b, 1]

    # K = 2 contraction as two broadcasted multiply-adds (VPU only, no MXU).
    t1 = b + x0 * w0 + x1 * w1           # (B, OUT_F)

    # torch.stack([t1] * 3, dim=1) folded into the kernel's single store.
    o_ref[...] = jnp.broadcast_to(t1[:, None, :], (B, STACK, OUT_F))


@functools.partial(jax.jit, static_argnames=())
def model_forward(x, weight, bias):
    """x: (B, IN_F) f32, weight: (OUT_F, IN_F) f32, bias: (OUT_F,) f32
       returns (B, STACK, OUT_F) f32 — matches torch.stack([t1]*3, dim=1)."""
    x = x.astype(jnp.float32)
    weight = weight.astype(jnp.float32)
    bias = bias.astype(jnp.float32)

    # One packed operand -> one input DMA; all of this fuses under jit.
    packed = jnp.concatenate(
        [
            weight.T,                                         # rows 0..1
            bias.reshape(1, OUT_F),                           # row 2
            jnp.broadcast_to(x[:, 0:1], (B, OUT_F)),          # rows 3..4
            jnp.broadcast_to(x[:, 1:2], (B, OUT_F)),          # rows 5..6
            jnp.zeros((1, OUT_F), jnp.float32),               # row 7 (pad to 8)
        ],
        axis=0,
    )

    out = pl.pallas_call(
        _linear_stack_kernel,
        out_shape=jax.ShapeDtypeStruct((B, STACK, OUT_F), jnp.float32),
        in_specs=[pl.BlockSpec(memory_space=pltpu.MemorySpace.VMEM)],
        out_specs=pl.BlockSpec(memory_space=pltpu.MemorySpace.VMEM),
        cost_estimate=pl.CostEstimate(
            flops=2 * B * IN_F * OUT_F,
            transcendentals=0,
            bytes_accessed=(8 * OUT_F + B * STACK * OUT_F) * 4,
        ),
    )(packed)
    return out


if __name__ == "__main__":
    key = jax.random.PRNGKey(0)
    kx, kw, kb = jax.random.split(key, 3)

    x = jax.random.normal(kx, (B, IN_F), dtype=jnp.float32)
    # Deterministic synthetic parameters (nn.Linear(2, 3) shapes).
    weight = jax.random.normal(kw, (OUT_F, IN_F), dtype=jnp.float32) * 0.5
    bias = jax.random.normal(kb, (OUT_F,), dtype=jnp.float32) * 0.1

    out = model_forward(x, weight, bias)
    out = jax.block_until_ready(out)

    # Reference check in plain JAX.
    t1_ref = x @ weight.T + bias
    ref = jnp.stack([t1_ref] * STACK, axis=1)
    assert out.shape == (B, STACK, OUT_F), out.shape
    assert jnp.allclose(out, ref, atol=1e-5, rtol=1e-5)

    print("KERNEL_OK")
</pallas_src>

<mosaic_0001>
module attributes {stable_mosaic.version = 11 : i64} {
  func.func @_linear_stack_kernel(%arg0: memref<8x3xf32, #tpu.memory_space<vmem>>, %arg1: memref<2x3x3xf32, #tpu.memory_space<vmem>>) attributes {dimension_semantics = [], scalar_prefetch = 0 : i64, scratch_operands = 0 : i64, tpu.core_type = #tpu.core_type<tc>} {
    %c0 = arith.constant 0 : index
    %c0_0 = arith.constant 0 : index
    %0 = vector.load %arg0[%c0, %c0_0] : memref<8x3xf32, #tpu.memory_space<vmem>>, vector<8x3xf32>
    %1 = vector.extract_strided_slice %0 {offsets = [0, 0], sizes = [1, 3], strides = [1, 1]} : vector<8x3xf32> to vector<1x3xf32>
    %2 = vector.extract_strided_slice %0 {offsets = [1, 0], sizes = [1, 3], strides = [1, 1]} : vector<8x3xf32> to vector<1x3xf32>
    %3 = vector.extract_strided_slice %0 {offsets = [2, 0], sizes = [1, 3], strides = [1, 1]} : vector<8x3xf32> to vector<1x3xf32>
    %4 = vector.extract_strided_slice %0 {offsets = [3, 0], sizes = [2, 3], strides = [1, 1]} : vector<8x3xf32> to vector<2x3xf32>
    %5 = vector.extract_strided_slice %0 {offsets = [5, 0], sizes = [2, 3], strides = [1, 1]} : vector<8x3xf32> to vector<2x3xf32>
    %6 = vector.broadcast %1 : vector<1x3xf32> to vector<2x3xf32>
    %7 = arith.mulf %4, %6 : vector<2x3xf32>
    %8 = vector.broadcast %3 : vector<1x3xf32> to vector<2x3xf32>
    %9 = arith.addf %8, %7 : vector<2x3xf32>
    %10 = vector.broadcast %2 : vector<1x3xf32> to vector<2x3xf32>
    %11 = arith.mulf %5, %10 : vector<2x3xf32>
    %12 = arith.addf %9, %11 : vector<2x3xf32>
    %13 = vector.shape_cast %12 : vector<2x3xf32> to vector<2x1x3xf32>
    %14 = vector.shape_cast %13 : vector<2x1x3xf32> to vector<2x1x3xf32>
    %15 = vector.broadcast %14 : vector<2x1x3xf32> to vector<2x3x3xf32>
    %c0_1 = arith.constant 0 : index
    %c0_2 = arith.constant 0 : index
    %c0_3 = arith.constant 0 : index
    %16 = vector.load %arg1[%c0_1, %c0_2, %c0_3] : memref<2x3x3xf32, #tpu.memory_space<vmem>>, vector<2x3x3xf32>
    tpu.vector_store %arg1[%c0_1, %c0_2, %c0_3], %15 {strides = array<i32>} : memref<2x3x3xf32, #tpu.memory_space<vmem>>, vector<2x3x3xf32>,
    return
  }
}

</mosaic_0001>

<bundles_post_ra>
// kernel: model_forward.1
= control target key start
LH: loop header
LB: loop body
LE: loop exit
PB: predicated region body
PF: predicated region fallthrough
CT: control target
= control target key end

     0   :  { %v9_v0 = vlaneseq  ;;  %v78_v2 = vmov 1966171168   ;;  %vm70_vm0 = vcmask 18432   ;;  %s98_s0 = inlined_call_operand.vmem [shape: f32[8,3], index: 0, kind: input, shape index: {}]   ;;  %s99_s1 = inlined_call_operand.vmem [shape: f32[2,3,3], index: 1, kind: output, shape index: {}]  }
   0x1   :  { %v31_v3 = vunpack.c.l.s4 %v78_v2  ;;  %v8_v4 = vld [vmem:[%s98_s0] sm:$0xff] }
   0x2   :  { %v10_v1 = vshrl.u32 %v9_v0, 7 }
   0x3   :  { %v32_v11 = vunpack.c.0.s8 %v31_v3 }
   0x4   :  { %v11_v5 = vsub.s32 0, %v10_v1  ;;  %v16_v6 = vsub.s32 2, %v10_v1  ;;  %v21_v7 = vsub.s32 1, %v10_v1 }
   0x5   :  { %v35_v16 = vsub.s32 %v32_v11, %v10_v1 }
   0x6   :  { %v12_v8 = vrot.slane %v8_v4, %v11_v5  ;;  %v17_v9 = vrot.slane %v8_v4, %v16_v6  ;;  %v22_v10 = vrot.slane %v8_v4, %v21_v7 }
   0x8   :  { %v13_v12 = vmul.f32 %v12_v8, %v8_v4  ;;  %v23_v13 = vmul.f32 %v22_v10, %v8_v4 }
   0xa   :  { %v18_v14 = vadd.f32 %v17_v9, %v13_v12  ;;  %v25_v15 = vrot.slane %v23_v13, 2 }
   0xc   :  { %v27_v17 = vadd.f32 %v25_v15, %v18_v14 }
   0xe   :  { %v36_v18 = vrot.slane %v27_v17, %v35_v16  ;;  %v29_v19 = vcombine.high %v27_v17, %v27_v17 }
  0x10   :  { %v44_v20 = vcombine.high %v36_v18, %v36_v18  ;;  %v43_v21 = vrot.slane %v29_v19, %v35_v16 }
  0x12   :  { %v58_v22 = vrot.slane %v44_v20, %v35_v16  ;;  %v51_v23 = vrot.slane %v43_v21, %v35_v16 }
  0x14   :  { %v59_v24 = vcombine.high %v58_v22, %v58_v22  ;;  %v67_v25 = vrot.slane %v51_v23, %v11_v5 }
  0x16   :  { %v63_v26 = vrot.slane %v59_v24, %v11_v5  ;;  %72 = vst.msk [vmem:[%s99_s1 + $0x4] sm:$0x7] %vm70_vm0, %v67_v25 }
  0x18   :  { %71 = vst.msk [vmem:[%s99_s1] sm:$0x7] %vm70_vm0, %v63_v26 }

</bundles_post_ra>
